<compile_context>
chip_gen: v6e
topology: v6e:2x2x1
jax: 0.10.0
libtpu: 0.0.40
codegen_flags: <defaults>
</compile_context>

<pallas_src>
import functools

import jax
import jax.numpy as jnp
from jax import lax
from jax.experimental import pallas as pl
from jax.experimental.pallas import tpu as pltpu


# -----------------------------------------------------------------------------
# Pallas kernel: one (bi)LSTM layer.  Layer 0 gathers pre-projected gate inputs
# from a VMEM table; the last layer fuses the classifier head.
# -----------------------------------------------------------------------------
def _lstm_layer_kernel(*refs, seq_len, hidden, num_dirs, gather_embed, with_head):
    it = iter(refs)
    # ---- inputs -------------------------------------------------------------
    if gather_embed:
        tok_ref = next(it)        # SMEM (T,)  int32 token ids
        tbl_ref = next(it)        # VMEM (V, D*4H)  pre-projected table
                                  #   row v = emb[v] @ W_ih + (b_ih + b_hh)
    else:
        x_ref = next(it)          # VMEM (T, Din)
        wih_ref = next(it)        # VMEM (Din, D*4H)  [i|f|g|o] per direction
        b_ref = next(it)          # VMEM (1, D*4H)    b_ih + b_hh folded
    whh_ref = next(it)            # VMEM (D, H, 4H)
    if with_head:
        wlab_ref = next(it)       # VMEM (D*H, L)
        blab_ref = next(it)       # VMEM (1, L)
        out_ref = next(it)        # VMEM (1, L) logits
    else:
        y_ref = next(it)          # VMEM (T, D*H)

    T, H, D = seq_len, hidden, num_dirs
    G = 4 * H

    # Pre-activation gate inputs, one (1, D*G) row per timestep.
    if gather_embed:
        # (1)(2) In-VMEM gather: one dynamic-sublane row load per token.  No
        # DMAs, no semaphores, no scratch, no input-projection matmul — the
        # W_ih projection and the bias are already folded into the table.
        gx_rows = [tbl_ref[pl.ds(tok_ref[t], 1), :] for t in range(T)]
    else:
        # Hoisted input projection for non-embedding layers: ONE MXU matmul
        # for all timesteps and both directions, bias folded in here.
        gx = jnp.dot(x_ref[...], wih_ref[...],
                     preferred_element_type=jnp.float32) + b_ref[...]
        gx_rows = [gx[t:t + 1, :] for t in range(T)]

    # Hoist W_hh loads out of the unrolled loop (ref loads are not CSE'd).
    w_hh = [whh_ref[d] for d in range(D)]

    # (3) Sublane-stacked state: zeros match the module's init_hidden().
    h = jnp.zeros((D, H), jnp.float32)
    c = jnp.zeros((D, H), jnp.float32)
    rows = [[None] * T for _ in range(D)]    # rows[d][output_time] -> (1, H)

    # (6) Fully unrolled fused-direction recurrence, in-kernel time reversal
    # for the backward direction (no jnp-level [::-1]).
    for t in range(T):
        gate_parts = []
        for d in range(D):
            tt = t if d == 0 else T - 1 - t
            # (4) lane slice at d*G is 128-lane (vreg) aligned for H=32.
            gate_parts.append(
                gx_rows[tt][:, d * G:(d + 1) * G]
                + jnp.dot(h[d:d + 1, :], w_hh[d],
                          preferred_element_type=jnp.float32))
        gates = gate_parts[0] if D == 1 else jnp.concatenate(gate_parts, axis=0)
        # (3) one sigmoid + one tanh over both directions' (D, 4H) gates.
        sg = jax.nn.sigmoid(gates)
        th = jnp.tanh(gates)
        i_g = sg[:, 0 * H:1 * H]
        f_g = sg[:, 1 * H:2 * H]
        g_g = th[:, 2 * H:3 * H]
        o_g = sg[:, 3 * H:4 * H]
        c = f_g * c + i_g * g_g
        h = o_g * jnp.tanh(c)                 # one tanh for both directions
        for d in range(D):
            tt = t if d == 0 else T - 1 - t
            rows[d][tt] = h[d:d + 1, :]

    if with_head:
        # Fused classifier on y[-1] = [h_fwd(T-1) | h_bwd aligned at T-1].
        # Per-direction block matmul avoids a lane concat; ref slices are
        # static (zero-cost views).
        logits = blab_ref[...]
        for d in range(D):
            logits = logits + jnp.dot(rows[d][T - 1],
                                      wlab_ref[d * H:(d + 1) * H, :],
                                      preferred_element_type=jnp.float32)
        out_ref[...] = logits
    else:
        # (5) One full (T, D*H) store instead of per-direction column stores.
        cols = [jnp.concatenate(rows[d], axis=0) for d in range(D)]
        y_ref[...] = cols[0] if D == 1 else jnp.concatenate(cols, axis=1)


def run_lstm_layer(x_or_tokens, table_or_wih, whh_p, b_p, head, *,
                   hidden, num_dirs, gather_embed, with_head):
    vmem = pl.BlockSpec(memory_space=pltpu.MemorySpace.VMEM)
    smem = pl.BlockSpec(memory_space=pltpu.MemorySpace.SMEM)
    T = x_or_tokens.shape[0]

    if gather_embed:
        in_specs = [smem, vmem]                     # token ids, folded table
        inputs = [x_or_tokens, table_or_wih]
    else:
        in_specs = [vmem, vmem, vmem]               # x, W_ih, bias
        inputs = [x_or_tokens, table_or_wih, b_p]
    in_specs.append(vmem)                           # W_hh
    inputs.append(whh_p)

    if with_head:
        wlab_t, blab = head
        in_specs += [vmem, vmem]
        inputs += [wlab_t, blab]
        out_shape = jax.ShapeDtypeStruct((1, wlab_t.shape[1]), jnp.float32)
    else:
        out_shape = jax.ShapeDtypeStruct((T, num_dirs * hidden), jnp.float32)

    kernel = functools.partial(
        _lstm_layer_kernel, seq_len=T, hidden=hidden, num_dirs=num_dirs,
        gather_embed=gather_embed, with_head=with_head)

    return pl.pallas_call(
        kernel,
        out_shape=out_shape,
        in_specs=in_specs,
        out_specs=vmem,
    )(*inputs)


# -----------------------------------------------------------------------------
# Parameters (packed for the fused kernel) and forward wrapper
# -----------------------------------------------------------------------------
def init_params(key, embedding_dim, hidden_dim, vocab_size, label_size,
                num_layers, bidirectional):
    D = 1 + int(bidirectional)
    H = hidden_dim
    keys = jax.random.split(key, 1 + num_layers * D * 4 + 2)
    k_it = iter(keys)
    scale = 1.0 / jnp.sqrt(jnp.float32(H))

    params = {"embedding": jax.random.normal(
        next(k_it), (vocab_size, embedding_dim), dtype=jnp.float32)}

    lstm = []
    for l in range(num_layers):
        in_dim = embedding_dim if l == 0 else H * D
        wih_cols, whh_stack, b_cols = [], [], []
        for _ in range(D):
            w_ih = jax.random.uniform(next(k_it), (4 * H, in_dim),
                                      minval=-scale, maxval=scale)
            w_hh = jax.random.uniform(next(k_it), (4 * H, H),
                                      minval=-scale, maxval=scale)
            b_ih = jax.random.uniform(next(k_it), (4 * H,),
                                      minval=-scale, maxval=scale)
            b_hh = jax.random.uniform(next(k_it), (4 * H,),
                                      minval=-scale, maxval=scale)
            wih_cols.append(w_ih.T)            # (in_dim, 4H)
            whh_stack.append(w_hh.T)           # (H, 4H)
            b_cols.append(b_ih + b_hh)         # (4H,)
        lstm.append((jnp.concatenate(wih_cols, axis=1),           # (in_dim, D*4H)
                     jnp.stack(whh_stack, axis=0),                # (D, H, 4H)
                     jnp.concatenate(b_cols, axis=0)[None, :]))   # (1, D*4H)
    params["lstm"] = lstm

    # (1) Fold layer-0 W_ih AND the folded bias into the embedding table:
    # row v of table0 is the pre-activation gate input for token v.
    wih0, _, b0 = lstm[0]
    params["table0"] = params["embedding"] @ wih0 + b0            # (V, D*4H)

    d_out = H * D
    lin_scale = 1.0 / jnp.sqrt(jnp.float32(d_out))
    w_lab = jax.random.uniform(next(k_it), (label_size, d_out),
                               minval=-lin_scale, maxval=lin_scale)
    b_lab = jax.random.uniform(next(k_it), (label_size,),
                               minval=-lin_scale, maxval=lin_scale)
    params["hidden2label"] = (w_lab.T, b_lab[None, :])
    return params


def my_lstm_forward(X, params, num_layers, num_directions, hidden_dim):
    head = params["hidden2label"]
    layer_out = X
    for l in range(num_layers):
        is_last = (l == num_layers - 1)
        if l == 0:
            # Layer 0: gather pre-projected gate inputs straight from VMEM.
            _, whh_p, _ = params["lstm"][0]
            layer_out = run_lstm_layer(
                layer_out, params["table0"], whh_p, None,
                head if is_last else None,
                hidden=hidden_dim, num_dirs=num_directions,
                gather_embed=True, with_head=is_last)
        else:
            wih_p, whh_p, b_p = params["lstm"][l]
            layer_out = run_lstm_layer(
                layer_out, wih_p, whh_p, b_p,
                head if is_last else None,
                hidden=hidden_dim, num_dirs=num_directions,
                gather_embed=False, with_head=is_last)
    return layer_out                                # (1, label_size)


# Pure-JAX reference (same math, unfused) for a correctness sanity check.
def _reference_forward(X, params, num_layers, num_directions, hidden_dim):
    H = hidden_dim
    G = 4 * H

    def lstm_ref(x, wih_t, whh_t, b):
        def step(carry, x_t):
            h, c = carry
            g = x_t[None, :] @ wih_t + h @ whh_t + b
            i = jax.nn.sigmoid(g[:, :H]); f = jax.nn.sigmoid(g[:, H:2 * H])
            gg = jnp.tanh(g[:, 2 * H:3 * H]); o = jax.nn.sigmoid(g[:, 3 * H:])
            c = f * c + i * gg
            h = o * jnp.tanh(c)
            return (h, c), h[0]
        init = (jnp.zeros((1, H), jnp.float32), jnp.zeros((1, H), jnp.float32))
        _, ys = lax.scan(step, init, x)
        return ys

    layer_in = params["embedding"][X]
    for l in range(num_layers):
        wih_p, whh_p, b_p = params["lstm"][l]
        outs = []
        for d in range(num_directions):
            wih_t = wih_p[:, d * G:(d + 1) * G]
            whh_t = whh_p[d]
            b = b_p[:, d * G:(d + 1) * G]
            inp = layer_in if d == 0 else layer_in[::-1]
            y = lstm_ref(inp, wih_t, whh_t, b)
            if d == 1:
                y = y[::-1]
            outs.append(y)
        layer_in = outs[0] if num_directions == 1 else jnp.concatenate(outs, axis=-1)
    w_lab_t, b_lab = params["hidden2label"]
    return layer_in[-1:] @ w_lab_t + b_lab


if __name__ == "__main__":
    embedding_dim = 32
    hidden_dim = 32
    vocab_size = 50
    label_size = 5
    num_layers = 1
    bidirectional = True
    num_directions = 1 + int(bidirectional)
    seq_len = 8

    key = jax.random.PRNGKey(0)
    k_params, k_x = jax.random.split(key)
    params = init_params(k_params, embedding_dim, hidden_dim, vocab_size,
                         label_size, num_layers, bidirectional)
    X = jax.random.randint(k_x, (seq_len,), 0, vocab_size, dtype=jnp.int32)

    fwd = jax.jit(functools.partial(my_lstm_forward,
                                    num_layers=num_layers,
                                    num_directions=num_directions,
                                    hidden_dim=hidden_dim))
    out = fwd(X, params)
    jax.block_until_ready(out)
    assert out.shape == (1, label_size)

    ref = _reference_forward(X, params, num_layers, num_directions, hidden_dim)
    assert jnp.allclose(out, ref, atol=1e-4, rtol=1e-4), (out, ref)

    print("KERNEL_OK")
</pallas_src>

<mosaic_0001>
module attributes {stable_mosaic.version = 11 : i64} {
  func.func @_lstm_layer_kernel(%arg0: memref<8xi32, #tpu.memory_space<smem>>, %arg1: memref<50x256xf32, #tpu.memory_space<vmem>>, %arg2: memref<2x32x128xf32, #tpu.memory_space<vmem>>, %arg3: memref<64x5xf32, #tpu.memory_space<vmem>>, %arg4: memref<1x5xf32, #tpu.memory_space<vmem>>, %arg5: memref<1x5xf32, #tpu.memory_space<vmem>>) attributes {dimension_semantics = [], scalar_prefetch = 0 : i64, scratch_operands = 0 : i64, tpu.core_type = #tpu.core_type<tc>} {
    %c0 = arith.constant 0 : index
    %0 = memref.load %arg0[%c0] : memref<8xi32, #tpu.memory_space<smem>>
    %1 = arith.index_cast %0 : i32 to index
    %c0_0 = arith.constant 0 : index
    %2 = vector.load %arg1[%1, %c0_0] : memref<50x256xf32, #tpu.memory_space<vmem>>, vector<1x256xf32>
    %c1 = arith.constant 1 : index
    %3 = memref.load %arg0[%c1] : memref<8xi32, #tpu.memory_space<smem>>
    %4 = arith.index_cast %3 : i32 to index
    %c0_1 = arith.constant 0 : index
    %5 = vector.load %arg1[%4, %c0_1] : memref<50x256xf32, #tpu.memory_space<vmem>>, vector<1x256xf32>
    %c2 = arith.constant 2 : index
    %6 = memref.load %arg0[%c2] : memref<8xi32, #tpu.memory_space<smem>>
    %7 = arith.index_cast %6 : i32 to index
    %c0_2 = arith.constant 0 : index
    %8 = vector.load %arg1[%7, %c0_2] : memref<50x256xf32, #tpu.memory_space<vmem>>, vector<1x256xf32>
    %c3 = arith.constant 3 : index
    %9 = memref.load %arg0[%c3] : memref<8xi32, #tpu.memory_space<smem>>
    %10 = arith.index_cast %9 : i32 to index
    %c0_3 = arith.constant 0 : index
    %11 = vector.load %arg1[%10, %c0_3] : memref<50x256xf32, #tpu.memory_space<vmem>>, vector<1x256xf32>
    %c4 = arith.constant 4 : index
    %12 = memref.load %arg0[%c4] : memref<8xi32, #tpu.memory_space<smem>>
    %13 = arith.index_cast %12 : i32 to index
    %c0_4 = arith.constant 0 : index
    %14 = vector.load %arg1[%13, %c0_4] : memref<50x256xf32, #tpu.memory_space<vmem>>, vector<1x256xf32>
    %c5 = arith.constant 5 : index
    %15 = memref.load %arg0[%c5] : memref<8xi32, #tpu.memory_space<smem>>
    %16 = arith.index_cast %15 : i32 to index
    %c0_5 = arith.constant 0 : index
    %17 = vector.load %arg1[%16, %c0_5] : memref<50x256xf32, #tpu.memory_space<vmem>>, vector<1x256xf32>
    %c6 = arith.constant 6 : index
    %18 = memref.load %arg0[%c6] : memref<8xi32, #tpu.memory_space<smem>>
    %19 = arith.index_cast %18 : i32 to index
    %c0_6 = arith.constant 0 : index
    %20 = vector.load %arg1[%19, %c0_6] : memref<50x256xf32, #tpu.memory_space<vmem>>, vector<1x256xf32>
    %c7 = arith.constant 7 : index
    %21 = memref.load %arg0[%c7] : memref<8xi32, #tpu.memory_space<smem>>
    %22 = arith.index_cast %21 : i32 to index
    %c0_7 = arith.constant 0 : index
    %23 = vector.load %arg1[%22, %c0_7] : memref<50x256xf32, #tpu.memory_space<vmem>>, vector<1x256xf32>
    %c0_8 = arith.constant 0 : index
    %c0_9 = arith.constant 0 : index
    %c0_10 = arith.constant 0 : index
    %24 = vector.load %arg2[%c0_8, %c0_9, %c0_10] : memref<2x32x128xf32, #tpu.memory_space<vmem>>, vector<1x32x128xf32>
    %25 = vector.shape_cast %24 : vector<1x32x128xf32> to vector<32x128xf32>
    %c1_11 = arith.constant 1 : index
    %c0_12 = arith.constant 0 : index
    %c0_13 = arith.constant 0 : index
    %26 = vector.load %arg2[%c1_11, %c0_12, %c0_13] : memref<2x32x128xf32, #tpu.memory_space<vmem>>, vector<1x32x128xf32>
    %27 = vector.shape_cast %26 : vector<1x32x128xf32> to vector<32x128xf32>
    %cst = arith.constant 0.000000e+00 : f32
    %28 = vector.broadcast %cst : f32 to vector<2x32xf32>
    %cst_14 = arith.constant 0.000000e+00 : f32
    %29 = vector.broadcast %cst_14 : f32 to vector<2x32xf32>
    %30 = vector.extract_strided_slice %2 {offsets = [0, 0], sizes = [1, 128], strides = [1, 1]} : vector<1x256xf32> to vector<1x128xf32>
    %31 = vector.extract_strided_slice %28 {offsets = [0, 0], sizes = [1, 32], strides = [1, 1]} : vector<2x32xf32> to vector<1x32xf32>
    %cst_15 = arith.constant dense<0.000000e+00> : vector<1x128xf32>
    %32 = tpu.matmul %31, %25, %cst_15 {dimension_numbers = #tpu.dot_dimension_numbers<[1], [0], [0], [1], [0, 0, 1, 1], [], []>} : vector<1x32xf32>, vector<32x128xf32>, vector<1x128xf32> -> vector<1x128xf32>
    %33 = arith.addf %30, %32 : vector<1x128xf32>
    %34 = vector.extract_strided_slice %23 {offsets = [0, 128], sizes = [1, 128], strides = [1, 1]} : vector<1x256xf32> to vector<1x128xf32>
    %35 = vector.extract_strided_slice %28 {offsets = [1, 0], sizes = [1, 32], strides = [1, 1]} : vector<2x32xf32> to vector<1x32xf32>
    %cst_16 = arith.constant dense<0.000000e+00> : vector<1x128xf32>
    %36 = tpu.matmul %35, %27, %cst_16 {dimension_numbers = #tpu.dot_dimension_numbers<[1], [0], [0], [1], [0, 0, 1, 1], [], []>} : vector<1x32xf32>, vector<32x128xf32>, vector<1x128xf32> -> vector<1x128xf32>
    %37 = arith.addf %34, %36 : vector<1x128xf32>
    %38 = tpu.concatenate %33, %37 in 0 : vector<1x128xf32>, vector<1x128xf32> -> vector<2x128xf32>
    %39 = arith.negf %38 : vector<2x128xf32>
    %40 = math.exp %39 : vector<2x128xf32>
    %cst_17 = arith.constant 1.000000e+00 : f32
    %41 = vector.broadcast %cst_17 : f32 to vector<2x128xf32>
    %42 = arith.addf %41, %40 : vector<2x128xf32>
    %43 = arith.divf %41, %42 : vector<2x128xf32>
    %44 = math.tanh %38 : vector<2x128xf32>
    %45 = vector.extract_strided_slice %43 {offsets = [0, 0], sizes = [2, 32], strides = [1, 1]} : vector<2x128xf32> to vector<2x32xf32>
    %46 = vector.extract_strided_slice %43 {offsets = [0, 32], sizes = [2, 32], strides = [1, 1]} : vector<2x128xf32> to vector<2x32xf32>
    %47 = vector.extract_strided_slice %44 {offsets = [0, 64], sizes = [2, 32], strides = [1, 1]} : vector<2x128xf32> to vector<2x32xf32>
    %48 = vector.extract_strided_slice %43 {offsets = [0, 96], sizes = [2, 32], strides = [1, 1]} : vector<2x128xf32> to vector<2x32xf32>
    %49 = arith.mulf %46, %29 : vector<2x32xf32>
    %50 = arith.mulf %45, %47 : vector<2x32xf32>
    %51 = arith.addf %49, %50 : vector<2x32xf32>
    %52 = math.tanh %51 : vector<2x32xf32>
    %53 = arith.mulf %48, %52 : vector<2x32xf32>
    %54 = vector.extract_strided_slice %53 {offsets = [1, 0], sizes = [1, 32], strides = [1, 1]} : vector<2x32xf32> to vector<1x32xf32>
    %55 = vector.extract_strided_slice %5 {offsets = [0, 0], sizes = [1, 128], strides = [1, 1]} : vector<1x256xf32> to vector<1x128xf32>
    %56 = vector.extract_strided_slice %53 {offsets = [0, 0], sizes = [1, 32], strides = [1, 1]} : vector<2x32xf32> to vector<1x32xf32>
    %cst_18 = arith.constant dense<0.000000e+00> : vector<1x128xf32>
    %57 = tpu.matmul %56, %25, %cst_18 {dimension_numbers = #tpu.dot_dimension_numbers<[1], [0], [0], [1], [0, 0, 1, 1], [], []>} : vector<1x32xf32>, vector<32x128xf32>, vector<1x128xf32> -> vector<1x128xf32>
    %58 = arith.addf %55, %57 : vector<1x128xf32>
    %59 = vector.extract_strided_slice %20 {offsets = [0, 128], sizes = [1, 128], strides = [1, 1]} : vector<1x256xf32> to vector<1x128xf32>
    %60 = vector.extract_strided_slice %53 {offsets = [1, 0], sizes = [1, 32], strides = [1, 1]} : vector<2x32xf32> to vector<1x32xf32>
    %cst_19 = arith.constant dense<0.000000e+00> : vector<1x128xf32>
    %61 = tpu.matmul %60, %27, %cst_19 {dimension_numbers = #tpu.dot_dimension_numbers<[1], [0], [0], [1], [0, 0, 1, 1], [], []>} : vector<1x32xf32>, vector<32x128xf32>, vector<1x128xf32> -> vector<1x128xf32>
    %62 = arith.addf %59, %61 : vector<1x128xf32>
    %63 = tpu.concatenate %58, %62 in 0 : vector<1x128xf32>, vector<1x128xf32> -> vector<2x128xf32>
    %64 = arith.negf %63 : vector<2x128xf32>
    %65 = math.exp %64 : vector<2x128xf32>
    %cst_20 = arith.constant 1.000000e+00 : f32
    %66 = vector.broadcast %cst_20 : f32 to vector<2x128xf32>
    %67 = arith.addf %66, %65 : vector<2x128xf32>
    %68 = arith.divf %66, %67 : vector<2x128xf32>
    %69 = math.tanh %63 : vector<2x128xf32>
    %70 = vector.extract_strided_slice %68 {offsets = [0, 0], sizes = [2, 32], strides = [1, 1]} : vector<2x128xf32> to vector<2x32xf32>
    %71 = vector.extract_strided_slice %68 {offsets = [0, 32], sizes = [2, 32], strides = [1, 1]} : vector<2x128xf32> to vector<2x32xf32>
    %72 = vector.extract_strided_slice %69 {offsets = [0, 64], sizes = [2, 32], strides = [1, 1]} : vector<2x128xf32> to vector<2x32xf32>
    %73 = vector.extract_strided_slice %68 {offsets = [0, 96], sizes = [2, 32], strides = [1, 1]} : vector<2x128xf32> to vector<2x32xf32>
    %74 = arith.mulf %71, %51 : vector<2x32xf32>
    %75 = arith.mulf %70, %72 : vector<2x32xf32>
    %76 = arith.addf %74, %75 : vector<2x32xf32>
    %77 = math.tanh %76 : vector<2x32xf32>
    %78 = arith.mulf %73, %77 : vector<2x32xf32>
    %79 = vector.extract_strided_slice %8 {offsets = [0, 0], sizes = [1, 128], strides = [1, 1]} : vector<1x256xf32> to vector<1x128xf32>
    %80 = vector.extract_strided_slice %78 {offsets = [0, 0], sizes = [1, 32], strides = [1, 1]} : vector<2x32xf32> to vector<1x32xf32>
    %cst_21 = arith.constant dense<0.000000e+00> : vector<1x128xf32>
    %81 = tpu.matmul %80, %25, %cst_21 {dimension_numbers = #tpu.dot_dimension_numbers<[1], [0], [0], [1], [0, 0, 1, 1], [], []>} : vector<1x32xf32>, vector<32x128xf32>, vector<1x128xf32> -> vector<1x128xf32>
    %82 = arith.addf %79, %81 : vector<1x128xf32>
    %83 = vector.extract_strided_slice %17 {offsets = [0, 128], sizes = [1, 128], strides = [1, 1]} : vector<1x256xf32> to vector<1x128xf32>
    %84 = vector.extract_strided_slice %78 {offsets = [1, 0], sizes = [1, 32], strides = [1, 1]} : vector<2x32xf32> to vector<1x32xf32>
    %cst_22 = arith.constant dense<0.000000e+00> : vector<1x128xf32>
    %85 = tpu.matmul %84, %27, %cst_22 {dimension_numbers = #tpu.dot_dimension_numbers<[1], [0], [0], [1], [0, 0, 1, 1], [], []>} : vector<1x32xf32>, vector<32x128xf32>, vector<1x128xf32> -> vector<1x128xf32>
    %86 = arith.addf %83, %85 : vector<1x128xf32>
    %87 = tpu.concatenate %82, %86 in 0 : vector<1x128xf32>, vector<1x128xf32> -> vector<2x128xf32>
    %88 = arith.negf %87 : vector<2x128xf32>
    %89 = math.exp %88 : vector<2x128xf32>
    %cst_23 = arith.constant 1.000000e+00 : f32
    %90 = vector.broadcast %cst_23 : f32 to vector<2x128xf32>
    %91 = arith.addf %90, %89 : vector<2x128xf32>
    %92 = arith.divf %90, %91 : vector<2x128xf32>
    %93 = math.tanh %87 : vector<2x128xf32>
    %94 = vector.extract_strided_slice %92 {offsets = [0, 0], sizes = [2, 32], strides = [1, 1]} : vector<2x128xf32> to vector<2x32xf32>
    %95 = vector.extract_strided_slice %92 {offsets = [0, 32], sizes = [2, 32], strides = [1, 1]} : vector<2x128xf32> to vector<2x32xf32>
    %96 = vector.extract_strided_slice %93 {offsets = [0, 64], sizes = [2, 32], strides = [1, 1]} : vector<2x128xf32> to vector<2x32xf32>
    %97 = vector.extract_strided_slice %92 {offsets = [0, 96], sizes = [2, 32], strides = [1, 1]} : vector<2x128xf32> to vector<2x32xf32>
    %98 = arith.mulf %95, %76 : vector<2x32xf32>
    %99 = arith.mulf %94, %96 : vector<2x32xf32>
    %100 = arith.addf %98, %99 : vector<2x32xf32>
    %101 = math.tanh %100 : vector<2x32xf32>
    %102 = arith.mulf %97, %101 : vector<2x32xf32>
    %103 = vector.extract_strided_slice %11 {offsets = [0, 0], sizes = [1, 128], strides = [1, 1]} : vector<1x256xf32> to vector<1x128xf32>
    %104 = vector.extract_strided_slice %102 {offsets = [0, 0], sizes = [1, 32], strides = [1, 1]} : vector<2x32xf32> to vector<1x32xf32>
    %cst_24 = arith.constant dense<0.000000e+00> : vector<1x128xf32>
    %105 = tpu.matmul %104, %25, %cst_24 {dimension_numbers = #tpu.dot_dimension_numbers<[1], [0], [0], [1], [0, 0, 1, 1], [], []>} : vector<1x32xf32>, vector<32x128xf32>, vector<1x128xf32> -> vector<1x128xf32>
    %106 = arith.addf %103, %105 : vector<1x128xf32>
    %107 = vector.extract_strided_slice %14 {offsets = [0, 128], sizes = [1, 128], strides = [1, 1]} : vector<1x256xf32> to vector<1x128xf32>
    %108 = vector.extract_strided_slice %102 {offsets = [1, 0], sizes = [1, 32], strides = [1, 1]} : vector<2x32xf32> to vector<1x32xf32>
    %cst_25 = arith.constant dense<0.000000e+00> : vector<1x128xf32>
    %109 = tpu.matmul %108, %27, %cst_25 {dimension_numbers = #tpu.dot_dimension_numbers<[1], [0], [0], [1], [0, 0, 1, 1], [], []>} : vector<1x32xf32>, vector<32x128xf32>, vector<1x128xf32> -> vector<1x128xf32>
    %110 = arith.addf %107, %109 : vector<1x128xf32>
    %111 = tpu.concatenate %106, %110 in 0 : vector<1x128xf32>, vector<1x128xf32> -> vector<2x128xf32>
    %112 = arith.negf %111 : vector<2x128xf32>
    %113 = math.exp %112 : vector<2x128xf32>
    %cst_26 = arith.constant 1.000000e+00 : f32
    %114 = vector.broadcast %cst_26 : f32 to vector<2x128xf32>
    %115 = arith.addf %114, %113 : vector<2x128xf32>
    %116 = arith.divf %114, %115 : vector<2x128xf32>
    %117 = math.tanh %111 : vector<2x128xf32>
    %118 = vector.extract_strided_slice %116 {offsets = [0, 0], sizes = [2, 32], strides = [1, 1]} : vector<2x128xf32> to vector<2x32xf32>
    %119 = vector.extract_strided_slice %116 {offsets = [0, 32], sizes = [2, 32], strides = [1, 1]} : vector<2x128xf32> to vector<2x32xf32>
    %120 = vector.extract_strided_slice %117 {offsets = [0, 64], sizes = [2, 32], strides = [1, 1]} : vector<2x128xf32> to vector<2x32xf32>
    %121 = vector.extract_strided_slice %116 {offsets = [0, 96], sizes = [2, 32], strides = [1, 1]} : vector<2x128xf32> to vector<2x32xf32>
    %122 = arith.mulf %119, %100 : vector<2x32xf32>
    %123 = arith.mulf %118, %120 : vector<2x32xf32>
    %124 = arith.addf %122, %123 : vector<2x32xf32>
    %125 = math.tanh %124 : vector<2x32xf32>
    %126 = arith.mulf %121, %125 : vector<2x32xf32>
    %127 = vector.extract_strided_slice %14 {offsets = [0, 0], sizes = [1, 128], strides = [1, 1]} : vector<1x256xf32> to vector<1x128xf32>
    %128 = vector.extract_strided_slice %126 {offsets = [0, 0], sizes = [1, 32], strides = [1, 1]} : vector<2x32xf32> to vector<1x32xf32>
    %cst_27 = arith.constant dense<0.000000e+00> : vector<1x128xf32>
    %129 = tpu.matmul %128, %25, %cst_27 {dimension_numbers = #tpu.dot_dimension_numbers<[1], [0], [0], [1], [0, 0, 1, 1], [], []>} : vector<1x32xf32>, vector<32x128xf32>, vector<1x128xf32> -> vector<1x128xf32>
    %130 = arith.addf %127, %129 : vector<1x128xf32>
    %131 = vector.extract_strided_slice %11 {offsets = [0, 128], sizes = [1, 128], strides = [1, 1]} : vector<1x256xf32> to vector<1x128xf32>
    %132 = vector.extract_strided_slice %126 {offsets = [1, 0], sizes = [1, 32], strides = [1, 1]} : vector<2x32xf32> to vector<1x32xf32>
    %cst_28 = arith.constant dense<0.000000e+00> : vector<1x128xf32>
    %133 = tpu.matmul %132, %27, %cst_28 {dimension_numbers = #tpu.dot_dimension_numbers<[1], [0], [0], [1], [0, 0, 1, 1], [], []>} : vector<1x32xf32>, vector<32x128xf32>, vector<1x128xf32> -> vector<1x128xf32>
    %134 = arith.addf %131, %133 : vector<1x128xf32>
    %135 = tpu.concatenate %130, %134 in 0 : vector<1x128xf32>, vector<1x128xf32> -> vector<2x128xf32>
    %136 = arith.negf %135 : vector<2x128xf32>
    %137 = math.exp %136 : vector<2x128xf32>
    %cst_29 = arith.constant 1.000000e+00 : f32
    %138 = vector.broadcast %cst_29 : f32 to vector<2x128xf32>
    %139 = arith.addf %138, %137 : vector<2x128xf32>
    %140 = arith.divf %138, %139 : vector<2x128xf32>
    %141 = math.tanh %135 : vector<2x128xf32>
    %142 = vector.extract_strided_slice %140 {offsets = [0, 0], sizes = [2, 32], strides = [1, 1]} : vector<2x128xf32> to vector<2x32xf32>
    %143 = vector.extract_strided_slice %140 {offsets = [0, 32], sizes = [2, 32], strides = [1, 1]} : vector<2x128xf32> to vector<2x32xf32>
    %144 = vector.extract_strided_slice %141 {offsets = [0, 64], sizes = [2, 32], strides = [1, 1]} : vector<2x128xf32> to vector<2x32xf32>
    %145 = vector.extract_strided_slice %140 {offsets = [0, 96], sizes = [2, 32], strides = [1, 1]} : vector<2x128xf32> to vector<2x32xf32>
    %146 = arith.mulf %143, %124 : vector<2x32xf32>
    %147 = arith.mulf %142, %144 : vector<2x32xf32>
    %148 = arith.addf %146, %147 : vector<2x32xf32>
    %149 = math.tanh %148 : vector<2x32xf32>
    %150 = arith.mulf %145, %149 : vector<2x32xf32>
    %151 = vector.extract_strided_slice %17 {offsets = [0, 0], sizes = [1, 128], strides = [1, 1]} : vector<1x256xf32> to vector<1x128xf32>
    %152 = vector.extract_strided_slice %150 {offsets = [0, 0], sizes = [1, 32], strides = [1, 1]} : vector<2x32xf32> to vector<1x32xf32>
    %cst_30 = arith.constant dense<0.000000e+00> : vector<1x128xf32>
    %153 = tpu.matmul %152, %25, %cst_30 {dimension_numbers = #tpu.dot_dimension_numbers<[1], [0], [0], [1], [0, 0, 1, 1], [], []>} : vector<1x32xf32>, vector<32x128xf32>, vector<1x128xf32> -> vector<1x128xf32>
    %154 = arith.addf %151, %153 : vector<1x128xf32>
    %155 = vector.extract_strided_slice %8 {offsets = [0, 128], sizes = [1, 128], strides = [1, 1]} : vector<1x256xf32> to vector<1x128xf32>
    %156 = vector.extract_strided_slice %150 {offsets = [1, 0], sizes = [1, 32], strides = [1, 1]} : vector<2x32xf32> to vector<1x32xf32>
    %cst_31 = arith.constant dense<0.000000e+00> : vector<1x128xf32>
    %157 = tpu.matmul %156, %27, %cst_31 {dimension_numbers = #tpu.dot_dimension_numbers<[1], [0], [0], [1], [0, 0, 1, 1], [], []>} : vector<1x32xf32>, vector<32x128xf32>, vector<1x128xf32> -> vector<1x128xf32>
    %158 = arith.addf %155, %157 : vector<1x128xf32>
    %159 = tpu.concatenate %154, %158 in 0 : vector<1x128xf32>, vector<1x128xf32> -> vector<2x128xf32>
    %160 = arith.negf %159 : vector<2x128xf32>
    %161 = math.exp %160 : vector<2x128xf32>
    %cst_32 = arith.constant 1.000000e+00 : f32
    %162 = vector.broadcast %cst_32 : f32 to vector<2x128xf32>
    %163 = arith.addf %162, %161 : vector<2x128xf32>
    %164 = arith.divf %162, %163 : vector<2x128xf32>
    %165 = math.tanh %159 : vector<2x128xf32>
    %166 = vector.extract_strided_slice %164 {offsets = [0, 0], sizes = [2, 32], strides = [1, 1]} : vector<2x128xf32> to vector<2x32xf32>
    %167 = vector.extract_strided_slice %164 {offsets = [0, 32], sizes = [2, 32], strides = [1, 1]} : vector<2x128xf32> to vector<2x32xf32>
    %168 = vector.extract_strided_slice %165 {offsets = [0, 64], sizes = [2, 32], strides = [1, 1]} : vector<2x128xf32> to vector<2x32xf32>
    %169 = vector.extract_strided_slice %164 {offsets = [0, 96], sizes = [2, 32], strides = [1, 1]} : vector<2x128xf32> to vector<2x32xf32>
    %170 = arith.mulf %167, %148 : vector<2x32xf32>
    %171 = arith.mulf %166, %168 : vector<2x32xf32>
    %172 = arith.addf %170, %171 : vector<2x32xf32>
    %173 = math.tanh %172 : vector<2x32xf32>
    %174 = arith.mulf %169, %173 : vector<2x32xf32>
    %175 = vector.extract_strided_slice %20 {offsets = [0, 0], sizes = [1, 128], strides = [1, 1]} : vector<1x256xf32> to vector<1x128xf32>
    %176 = vector.extract_strided_slice %174 {offsets = [0, 0], sizes = [1, 32], strides = [1, 1]} : vector<2x32xf32> to vector<1x32xf32>
    %cst_33 = arith.constant dense<0.000000e+00> : vector<1x128xf32>
    %177 = tpu.matmul %176, %25, %cst_33 {dimension_numbers = #tpu.dot_dimension_numbers<[1], [0], [0], [1], [0, 0, 1, 1], [], []>} : vector<1x32xf32>, vector<32x128xf32>, vector<1x128xf32> -> vector<1x128xf32>
    %178 = arith.addf %175, %177 : vector<1x128xf32>
    %179 = vector.extract_strided_slice %5 {offsets = [0, 128], sizes = [1, 128], strides = [1, 1]} : vector<1x256xf32> to vector<1x128xf32>
    %180 = vector.extract_strided_slice %174 {offsets = [1, 0], sizes = [1, 32], strides = [1, 1]} : vector<2x32xf32> to vector<1x32xf32>
    %cst_34 = arith.constant dense<0.000000e+00> : vector<1x128xf32>
    %181 = tpu.matmul %180, %27, %cst_34 {dimension_numbers = #tpu.dot_dimension_numbers<[1], [0], [0], [1], [0, 0, 1, 1], [], []>} : vector<1x32xf32>, vector<32x128xf32>, vector<1x128xf32> -> vector<1x128xf32>
    %182 = arith.addf %179, %181 : vector<1x128xf32>
    %183 = tpu.concatenate %178, %182 in 0 : vector<1x128xf32>, vector<1x128xf32> -> vector<2x128xf32>
    %184 = arith.negf %183 : vector<2x128xf32>
    %185 = math.exp %184 : vector<2x128xf32>
    %cst_35 = arith.constant 1.000000e+00 : f32
    %186 = vector.broadcast %cst_35 : f32 to vector<2x128xf32>
    %187 = arith.addf %186, %185 : vector<2x128xf32>
    %188 = arith.divf %186, %187 : vector<2x128xf32>
    %189 = math.tanh %183 : vector<2x128xf32>
    %190 = vector.extract_strided_slice %188 {offsets = [0, 0], sizes = [2, 32], strides = [1, 1]} : vector<2x128xf32> to vector<2x32xf32>
    %191 = vector.extract_strided_slice %188 {offsets = [0, 32], sizes = [2, 32], strides = [1, 1]} : vector<2x128xf32> to vector<2x32xf32>
    %192 = vector.extract_strided_slice %189 {offsets = [0, 64], sizes = [2, 32], strides = [1, 1]} : vector<2x128xf32> to vector<2x32xf32>
    %193 = vector.extract_strided_slice %188 {offsets = [0, 96], sizes = [2, 32], strides = [1, 1]} : vector<2x128xf32> to vector<2x32xf32>
    %194 = arith.mulf %191, %172 : vector<2x32xf32>
    %195 = arith.mulf %190, %192 : vector<2x32xf32>
    %196 = arith.addf %194, %195 : vector<2x32xf32>
    %197 = math.tanh %196 : vector<2x32xf32>
    %198 = arith.mulf %193, %197 : vector<2x32xf32>
    %199 = vector.extract_strided_slice %23 {offsets = [0, 0], sizes = [1, 128], strides = [1, 1]} : vector<1x256xf32> to vector<1x128xf32>
    %200 = vector.extract_strided_slice %198 {offsets = [0, 0], sizes = [1, 32], strides = [1, 1]} : vector<2x32xf32> to vector<1x32xf32>
    %cst_36 = arith.constant dense<0.000000e+00> : vector<1x128xf32>
    %201 = tpu.matmul %200, %25, %cst_36 {dimension_numbers = #tpu.dot_dimension_numbers<[1], [0], [0], [1], [0, 0, 1, 1], [], []>} : vector<1x32xf32>, vector<32x128xf32>, vector<1x128xf32> -> vector<1x128xf32>
    %202 = arith.addf %199, %201 : vector<1x128xf32>
    %203 = vector.extract_strided_slice %2 {offsets = [0, 128], sizes = [1, 128], strides = [1, 1]} : vector<1x256xf32> to vector<1x128xf32>
    %204 = vector.extract_strided_slice %198 {offsets = [1, 0], sizes = [1, 32], strides = [1, 1]} : vector<2x32xf32> to vector<1x32xf32>
    %cst_37 = arith.constant dense<0.000000e+00> : vector<1x128xf32>
    %205 = tpu.matmul %204, %27, %cst_37 {dimension_numbers = #tpu.dot_dimension_numbers<[1], [0], [0], [1], [0, 0, 1, 1], [], []>} : vector<1x32xf32>, vector<32x128xf32>, vector<1x128xf32> -> vector<1x128xf32>
    %206 = arith.addf %203, %205 : vector<1x128xf32>
    %207 = tpu.concatenate %202, %206 in 0 : vector<1x128xf32>, vector<1x128xf32> -> vector<2x128xf32>
    %208 = arith.negf %207 : vector<2x128xf32>
    %209 = math.exp %208 : vector<2x128xf32>
    %cst_38 = arith.constant 1.000000e+00 : f32
    %210 = vector.broadcast %cst_38 : f32 to vector<2x128xf32>
    %211 = arith.addf %210, %209 : vector<2x128xf32>
    %212 = arith.divf %210, %211 : vector<2x128xf32>
    %213 = math.tanh %207 : vector<2x128xf32>
    %214 = vector.extract_strided_slice %212 {offsets = [0, 0], sizes = [2, 32], strides = [1, 1]} : vector<2x128xf32> to vector<2x32xf32>
    %215 = vector.extract_strided_slice %212 {offsets = [0, 32], sizes = [2, 32], strides = [1, 1]} : vector<2x128xf32> to vector<2x32xf32>
    %216 = vector.extract_strided_slice %213 {offsets = [0, 64], sizes = [2, 32], strides = [1, 1]} : vector<2x128xf32> to vector<2x32xf32>
    %217 = vector.extract_strided_slice %212 {offsets = [0, 96], sizes = [2, 32], strides = [1, 1]} : vector<2x128xf32> to vector<2x32xf32>
    %218 = arith.mulf %215, %196 : vector<2x32xf32>
    %219 = arith.mulf %214, %216 : vector<2x32xf32>
    %220 = arith.addf %218, %219 : vector<2x32xf32>
    %221 = math.tanh %220 : vector<2x32xf32>
    %222 = arith.mulf %217, %221 : vector<2x32xf32>
    %223 = vector.extract_strided_slice %222 {offsets = [0, 0], sizes = [1, 32], strides = [1, 1]} : vector<2x32xf32> to vector<1x32xf32>
    %c0_39 = arith.constant 0 : index
    %c0_40 = arith.constant 0 : index
    %224 = vector.load %arg4[%c0_39, %c0_40] : memref<1x5xf32, #tpu.memory_space<vmem>>, vector<1x5xf32>
    %c0_41 = arith.constant 0 : index
    %c0_42 = arith.constant 0 : index
    %225 = vector.load %arg3[%c0_41, %c0_42] : memref<64x5xf32, #tpu.memory_space<vmem>>, vector<32x5xf32>
    %cst_43 = arith.constant dense<0.000000e+00> : vector<1x5xf32>
    %226 = tpu.matmul %223, %225, %cst_43 {dimension_numbers = #tpu.dot_dimension_numbers<[1], [0], [0], [1], [0, 0, 1, 1], [], []>} : vector<1x32xf32>, vector<32x5xf32>, vector<1x5xf32> -> vector<1x5xf32>
    %227 = arith.addf %224, %226 : vector<1x5xf32>
    %c32 = arith.constant 32 : index
    %c0_44 = arith.constant 0 : index
    %228 = vector.load %arg3[%c32, %c0_44] : memref<64x5xf32, #tpu.memory_space<vmem>>, vector<32x5xf32>
    %cst_45 = arith.constant dense<0.000000e+00> : vector<1x5xf32>
    %229 = tpu.matmul %54, %228, %cst_45 {dimension_numbers = #tpu.dot_dimension_numbers<[1], [0], [0], [1], [0, 0, 1, 1], [], []>} : vector<1x32xf32>, vector<32x5xf32>, vector<1x5xf32> -> vector<1x5xf32>
    %230 = arith.addf %227, %229 : vector<1x5xf32>
    %c0_46 = arith.constant 0 : index
    %c0_47 = arith.constant 0 : index
    %231 = vector.load %arg5[%c0_46, %c0_47] : memref<1x5xf32, #tpu.memory_space<vmem>>, vector<1x5xf32>
    tpu.vector_store %arg5[%c0_46, %c0_47], %230 {strides = array<i32>} : memref<1x5xf32, #tpu.memory_space<vmem>>, vector<1x5xf32>,
    return
  }
}

</mosaic_0001>

<bundles_post_ra>
// kernel: my_lstm_forward.1
= control target key start
LH: loop header
LB: loop body
LE: loop exit
PB: predicated region body
PF: predicated region fallthrough
CT: control target
= control target key end

     0   :  { %10 = vsyncpa [#allocation5], 0  ;;  %s2702_s0 = inlined_call_operand.vmem [shape: s32[8], index: 0, kind: input, shape index: {}]   ;;  %s2703_s1 = inlined_call_operand.hbm [shape: f32[50,256], index: 1, kind: input, shape index: {}]   ;;  %s2704_s2 = inlined_call_operand.vmem [shape: f32[2,32,128], index: 2, kind: input, shape index: {}]   ;;  %s2705_s3 = inlined_call_operand.vmem [shape: f32[64,5], index: 3, kind: input, shape index: {}]   ;;  %s2706_s4 = inlined_call_operand.vmem [shape: f32[1,5], index: 4, kind: input, shape index: {}]   ;;  %s2707_s5 = inlined_call_operand.hbm [shape: f32[1,5], index: 5, kind: output, shape index: {}]  }
   0x1   :  { %11 = vsyncpa [#allocation3], 0 }
   0x2   :  { %12 = vsyncpa [#allocation4], 0  ;;  %s19_s20 = sshll.u32 %s2702_s0, 4  ;;  %s20_s20 = int_to_ptr.vmem [resolvable:$true] %s19_s20 }
   0x3   :  { %s2238_s21 = scalar_lea.vmem %s20_s20, 16  ;;  %p2243_p1 = scmp.lt.s32.totalorder %s20_s20, %s20_s20 }
   0x4   :  { %p2239_p0 = scmp.ne.s32.totalorder %s20_s20, %s2238_s21  ;;  %p2244_p2 = scmp.lt.s32.totalorder %s2238_s21, %s2238_s21 }
   0x6   :  { %p2245_p3 = por %p2244_p2, %p2243_p1 }
   0x8   :  { %p2246_p4 = pnand %p2245_p3, %p2239_p0 }
   0xa   :  { %2249 = shalt.err (!%p2246_p4)
}
   0xb   :  { %s2296_s22 = smov [#allocation2]   ;;  %s2297_s23 = smov [#allocation6]  }
   0xc   :  { %22 = dma.vmem_to_smem %s20_s20, 16, %s2296_s22, [#allocation5]  }
   0xd   :  { %s28_s24 = sshll.u32 %s2297_s23, 4  ;;  %s29_s24 = int_to_ptr.vmem [resolvable:$true] %s28_s24 }
   0xe   :  { %s2258_s25 = scalar_lea.vmem %s29_s24, 1792  ;;  %p2263_p6 = scmp.lt.s32.totalorder %s29_s24, %s29_s24 }
   0xf   :  { %p2259_p5 = scmp.ne.s32.totalorder %s29_s24, %s2258_s25  ;;  %p2264_p7 = scmp.lt.s32.totalorder %s2258_s25, %s2258_s25 }
  0x11   :  { %p2265_p8 = por %p2264_p7, %p2263_p6 }
  0x13   :  { %p2266_p9 = pnand %p2265_p8, %p2259_p5 }
  0x15   :  { %2269 = shalt.err (!%p2266_p9)
}
  0x16   :  { %s2298_s0 = smov 256   ;;  %s2299_s26 = smov 16  }
  0x17   :  { %34 = dma.hbm_to_vmem [thread:$0]  %s2703_s1, 1792, %s29_s24, [#allocation3], %s2298_s0, %s2298_s0, %s2299_s26  }
  0x18   :  { %2290 = dma.done.wait [#allocation5], 16  }
  0x19   :  { %2291 = vsyncadd [#allocation5], 4294967280 }
  0x1a   :  { %2292 = dma.done.wait [#allocation3], 1792  }
  0x1b   :  { %2293 = vsyncadd [#allocation3], 4294965504 }
  0x1c   :  { %47 = sfence }
  0x1d   :  { %v2344_v0 = vld [vmem:[%s2704_s2 + $0x18] sm:$0xff]  ;;  %v2300_v2 = vmov 0.0   ;;  %v2356_v3 = vld [vmem:[%s2704_s2 + $0x10] sm:$0xff]  ;;  %v2370_v5 = vld [vmem:[%s2704_s2 + $0x8] sm:$0xff]  ;;  %vm2301_vm0 = vmmov 0   ;;  %s48_s19 = sld [smem:[#allocation2]]  ;;  %v287_v9 = vlaneseq }
  0x1e   :  { %v2349_v1 = vld [vmem:[%s2704_s2 + $0x38] sm:$0xff]  ;;  %1967 = vmatprep.subr.mxu0 %v2300_v2  ;;  %1978 = vmatprep.subr.mxu1 %v2300_v2  ;;  %v2361_v4 = vld [vmem:[%s2704_s2 + $0x30] sm:$0xff]  ;;  %v2375_v6 = vld [vmem:[%s2704_s2 + $0x28] sm:$0xff]  ;;  %vm292_vm1 = vcmask 1040384   ;;  %s2302_s29 = smov 64   ;;  %s2303_s30 = smov 32  }
  0x1f   :  { %1968 = vmatpush3.msra.mxu0 %v2344_v0  ;;  %1979 = vmatpush3.msra.mxu1 %v2349_v1  ;;  %v2384_v7 = vld [vmem:[%s2704_s2] sm:$0xff]  ;;  %v288_v11 = vshrl.u32 %v287_v9, 7  ;;  %vm137_vm2 = vcmask 261120   ;;  %s1835_s6 = sld [smem:[#allocation2 + $0x6]]  ;;  %vm1776_vm3 = vcmask 32768  }
  0x20   :  { %1969 = vmatprep.subr.mxu0 %v2300_v2  ;;  %1980 = vmatprep.subr.mxu1 %v2300_v2  ;;  %v2391_v8 = vld [vmem:[%s2704_s2 + $0x20] sm:$0xff]  ;;  %s1838_s2 = sld [smem:[#allocation2 + $0x7]] }
  0x21   :  { %1970 = vmatpush3.msra.mxu0 %v2356_v3  ;;  %1981 = vmatpush3.msra.mxu1 %v2361_v4  ;;  %v2430_v14 = vsub.s32 0, %v288_v11  ;;  %s1820_s7 = sld [smem:[#allocation2 + $0x1]] }
  0x22   :  { %1971 = vmatprep.subr.mxu0 %v2300_v2  ;;  %1982 = vmatprep.subr.mxu1 %v2300_v2  ;;  %s1832_s17 = sld [smem:[#allocation2 + $0x5]] }
  0x23   :  { %1972 = vmatpush3.msra.mxu0 %v2370_v5  ;;  %1983 = vmatpush3.msra.mxu1 %v2375_v6  ;;  %s49_s23 = sshra.s32 %s48_s19, 3  ;;  %s52_s25 = sand.u32 7, %s48_s19 }
  0x24   :  { %1973 = vmatprep.subr.mxu0 %v2300_v2  ;;  %1984 = vmatprep.subr.mxu1 %v2300_v2  ;;  %s1869_s0 = sshll.u32 %s49_s23, 4  ;;  %s1823_s18 = sld [smem:[#allocation2 + $0x2]] }
  0x25   :  { %1974 = vmatpush3.msra.mxu0 %v2384_v7  ;;  %1975 = vmatprep.mubr.msk.f32.mxu0 %vm2301_vm0, %v2300_v2  ;;  %s55_s26 = sadd.s32 %s1869_s0, %s52_s25  ;;  %s109_s1 = sshra.s32 %s1835_s6, 3 }
  0x26   :  { %1985 = vmatpush3.msra.mxu1 %v2391_v8  ;;  %1986 = vmatprep.mubr.msk.f32.mxu1 %vm2301_vm0, %v2300_v2  ;;  %s119_s20 = sshra.s32 %s1838_s2, 3  ;;  %s122_s21 = sand.u32 7, %s1838_s2 }
  0x27   :  { %1976 = vmatmul.mubr.f32.vlgmr.msra.gmra.mxu0 %v2300_v2  ;;  %1987 = vmatmul.mubr.f32.vlgmr.msra.gmra.mxu1 %v2300_v2  ;;  %s1876_s22 = sshll.u32 %s119_s20, 4  ;;  %s56_s28 = scalar_lea.vmem [#allocation6], %s55_s26 }
  0x28   :  { %1989 = vmatprep.subr.mxu0 %v2300_v2  ;;  %2000 = vmatprep.subr.mxu1 %v2300_v2  ;;  %s125_s24 = sadd.s32 %s1876_s22, %s122_s21  ;;  %v2428_v13 = vld [vmem:[%s56_s28] ss:$8 sm:$0x3]  ;;  %s112_s8 = sand.u32 7, %s1835_s6 }
  0x29   :  { %1990 = vmatpush3.msra.mxu0 %v2344_v0  ;;  %2001 = vmatpush3.msra.mxu1 %v2349_v1  ;;  %s126_s27 = scalar_lea.vmem [#allocation6], %s125_s24  ;;  %s1875_s9 = sshll.u32 %s109_s1, 4 }
  0x2a   :  { %1991 = vmatprep.subr.mxu0 %v2300_v2  ;;  %2002 = vmatprep.subr.mxu1 %v2300_v2  ;;  %v2425_v10 = vld [vmem:[%s126_s27] ss:$8 sm:$0x3]  ;;  %s59_s10 = sshra.s32 %s1820_s7, 3  ;;  %s115_s11 = sadd.s32 %s1875_s9, %s112_s8 }
  0x2b   :  { %1992 = vmatpush3.msra.mxu0 %v2356_v3  ;;  %2003 = vmatpush3.msra.mxu1 %v2361_v4  ;;  %v283_v12 = vrot.slane %v2425_v10, 1  ;;  %s62_s12 = sand.u32 7, %s1820_s7  ;;  %s1870_s13 = sshll.u32 %s59_s10, 4 }
  0x2c   :  { %1993 = vmatprep.subr.mxu0 %v2300_v2  ;;  %2004 = vmatprep.subr.mxu1 %v2300_v2  ;;  %s65_s14 = sadd.s32 %s1870_s13, %s62_s12  ;;  %s116_s15 = scalar_lea.vmem [#allocation6], %s115_s11 }
  0x2d   :  { %1994 = vmatpush3.msra.mxu0 %v2370_v5  ;;  %1997 = vmatprep.mubr.msk.f32.mxu0 %vm2301_vm0, %v2300_v2  ;;  %v2468_v39 = vld [vmem:[%s116_s15] ss:$8 sm:$0x3]  ;;  %s66_s16 = scalar_lea.vmem [#allocation6], %s65_s14  ;;  %s99_s2 = sshra.s32 %s1832_s17, 3 }
  0x2e   :  { %1995 = vmatprep.subr.mxu0 %v2300_v2  ;;  %2005 = vmatpush3.msra.mxu1 %v2375_v6  ;;  %v470_v40 = vrot.slane %v2468_v39, 1  ;;  %v2471_v42 = vld [vmem:[%s66_s16] ss:$8 sm:$0x3]  ;;  %s102_s19 = sand.u32 7, %s1832_s17  ;;  %s1874_s20 = sshll.u32 %s99_s2, 4 }
  0x2f   :  { %1996 = vmatpush3.msra.mxu0 %v2384_v7  ;;  %2006 = vmatprep.subr.mxu1 %v2300_v2  ;;  %s69_s21 = sshra.s32 %s1823_s18, 3  ;;  %s105_s22 = sadd.s32 %s1874_s20, %s102_s19 }
  0x30   :  { %2007 = vmatpush3.msra.mxu1 %v2391_v8  ;;  %2008 = vmatprep.mubr.msk.f32.mxu1 %vm2301_vm0, %v2300_v2  ;;  %s72_s23 = sand.u32 7, %s1823_s18  ;;  %s1871_s24 = sshll.u32 %s69_s21, 4 }
  0x31   :  { %2011 = vmatprep.subr.mxu0 %v2300_v2  ;;  %2022 = vmatprep.subr.mxu1 %v2300_v2  ;;  %s75_s25 = sadd.s32 %s1871_s24, %s72_s23  ;;  %s106_s0 = scalar_lea.vmem [#allocation6], %s105_s22 }
  0x32   :  { %s76_s26 = scalar_lea.vmem [#allocation6], %s75_s25  ;;  %s1829_s27 = sld [smem:[#allocation2 + $0x4]] }
  0x33   :  { %s1826_s28 = sld [smem:[#allocation2 + $0x3]] }
  0x38   :  { %s89_s6 = sshra.s32 %s1829_s27, 3  ;;  %s92_s7 = sand.u32 7, %s1829_s27 }
  0x39   :  { %s1873_s1 = sshll.u32 %s89_s6, 4  ;;  %s79_s8 = sshra.s32 %s1826_s28, 3 }
  0x3a   :  { %s95_s9 = sadd.s32 %s1873_s1, %s92_s7  ;;  %s82_s10 = sand.u32 7, %s1826_s28 }
  0x3b   :  { %s1872_s11 = sshll.u32 %s79_s8, 4  ;;  %s96_s13 = scalar_lea.vmem [#allocation6], %s95_s9 }
  0x3c   :  { %s85_s12 = sadd.s32 %s1872_s11, %s82_s10 }
  0x3d   :  { %s86_s14 = scalar_lea.vmem [#allocation6], %s85_s12 }
  0xe7   :  { %v207_v15 = vpop.f32.mrf.mxu0  ;;  %v278_v16 = vpop.f32.mrf.mxu1 }
  0xe8   :  { %v211_v17 = vadd.f32 %v207_v15, %v2428_v13  ;;  %v285_v18 = vadd.f32 %v283_v12, %v278_v16  ;;  %v2507_v12 = vld [vmem:[%s106_s0] ss:$8 sm:$0x3] }
  0xe9   :  { %v1977_v19 = vpop.f32.mrf.mxu0  ;;  %v1988_v20 = vpop.f32.mrf.mxu1  ;;  %v656_v15 = vrot.slane %v2507_v12, 1 }
  0xea   :  { %v290_v21 = vrot.slane %v285_v18, %v2430_v14 }
  0xec   :  { %v293_v22 = vsel %vm292_vm1, %v211_v17, %v290_v21  ;;  %v2510_v17 = vld [vmem:[%s76_s26] ss:$8 sm:$0x3] }
  0xed   :  { %2174 = vtanh.f32 %v293_v22  ;;  %v1845_v24 = vmul.f32 -1.442695, %v293_v22 }
  0xef   :  { %2176 = vpow2.f32 %v1845_v24 }
  0xfa   :  { %v2175_v23 = vpop.eup %2174 }
  0xfb   :  { %303 = vrot.lane.b32.xlu0 %v2175_v23, %s2302_s29 }
  0xfc   :  { %v2177_v25 = vpop.eup %2176 }
  0xfd   :  { %v297_v26 = vadd.f32 1.0, %v2177_v25 }
  0xff   :  { %2178 = vrcp.f32 %v297_v26 }
 0x10c   :  { %v2179_v27 = vpop.eup %2178 }
 0x10d   :  { %v301_v30 = vmul.f32 0.0, %v2179_v27 }
 0x16d   :  { %v304_v28 = vpop.permute.xlu0 %303 }
 0x16e   :  { %v306_v29 = vmul.f32 %v2179_v27, %v304_v28 }
 0x170   :  { %308 = vrot.lane.b32.xlu0 %v306_v29, %s2303_s30 }
 0x1e2   :  { %v309_v31 = vpop.permute.xlu0 %308 }
 0x1e3   :  { %v2437_v32 = vadd.f32 %v309_v31, %v301_v30 }
 0x1e5   :  { %2180 = vtanh.f32 %v2437_v32 }
 0x1f2   :  { %v2181_v33 = vpop.eup %2180 }
 0x1f3   :  { %314 = vrot.lane.b32.xlu1 %v2181_v33, %s2302_s29 }
 0x265   :  { %v315_v34 = vpop.permute.xlu1 %314 }
 0x266   :  { %v317_v35 = vmul.f32 %v2179_v27, %v315_v34 }
 0x268   :  { %v394_v36 = vrot.slane %v317_v35, 1  ;;  %319 = vrot.lane.b32.xlu0 %v317_v35, %s2303_s30 }
 0x26a   :  { %395 = vrot.lane.b32.xlu1 %v394_v36, %s2303_s30 }
 0x2da   :  { %v320_v37 = vpop.permute.xlu0 %319 }
 0x2db   :  { %1998 = vmatmul.mubr.msk.f32.vlgmr.msra.gmra.mxu0 %vm137_vm2, %v320_v37 }
 0x2dc   :  { %v2444_v38 = vpop.permute.xlu1 %395  ;;  %2012 = vmatpush3.msra.mxu0 %v2344_v0  ;;  %2019 = vmatprep.mubr.msk.f32.mxu0 %vm2301_vm0, %v2300_v2 }
 0x2dd   :  { %2009 = vmatmul.mubr.msk.f32.vlgmr.msra.gmra.mxu1 %vm137_vm2, %v2444_v38  ;;  %2013 = vmatprep.subr.mxu0 %v2300_v2 }
 0x2de   :  { %2014 = vmatpush3.msra.mxu0 %v2356_v3  ;;  %2023 = vmatpush3.msra.mxu1 %v2349_v1 }
 0x2df   :  { %2015 = vmatprep.subr.mxu0 %v2300_v2  ;;  %2024 = vmatprep.subr.mxu1 %v2300_v2 }
 0x2e0   :  { %2016 = vmatpush3.msra.mxu0 %v2370_v5  ;;  %2025 = vmatpush3.msra.mxu1 %v2361_v4 }
 0x2e1   :  { %2017 = vmatprep.subr.mxu0 %v2300_v2  ;;  %2026 = vmatprep.subr.mxu1 %v2300_v2 }
 0x2e2   :  { %2018 = vmatpush3.msra.mxu0 %v2384_v7  ;;  %2027 = vmatpush3.msra.mxu1 %v2375_v6 }
 0x2e3   :  { %2028 = vmatprep.subr.mxu1 %v2300_v2  ;;  %2030 = vmatprep.mubr.msk.f32.mxu1 %vm2301_vm0, %v2300_v2 }
 0x2e4   :  { %2029 = vmatpush3.msra.mxu1 %v2391_v8  ;;  %2033 = vmatprep.subr.mxu0 %v2300_v2 }
 0x2e5   :  { %2044 = vmatprep.subr.mxu1 %v2300_v2 }
 0x39b   :  { %v389_v41 = vpop.f32.mrf.mxu0 }
 0x39c   :  { %v393_v47 = vadd.f32 %v389_v41, %v2471_v42 }
 0x39d   :  { %v1999_v43 = vpop.f32.mrf.mxu0  ;;  %v465_v44 = vpop.f32.mrf.mxu1 }
 0x39e   :  { %v472_v45 = vadd.f32 %v470_v40, %v465_v44  ;;  %v2546_v44 = vld [vmem:[%s96_s13] ss:$8 sm:$0x3] }
 0x39f   :  { %v2010_v46 = vpop.f32.mrf.mxu1 }
 0x3a0   :  { %v477_v48 = vrot.slane %v472_v45, %v2430_v14  ;;  %v842_v45 = vrot.slane %v2546_v44, 1 }
 0x3a2   :  { %v479_v49 = vsel %vm292_vm1, %v393_v47, %v477_v48  ;;  %v87_v47 = vld [vmem:[%s86_s14] ss:$8 sm:$0x3] }
 0x3a3   :  { %2182 = vtanh.f32 %v479_v49  ;;  %v1848_v51 = vmul.f32 -1.442695, %v479_v49 }
 0x3a5   :  { %2184 = vpow2.f32 %v1848_v51 }
 0x3b0   :  { %v2183_v50 = vpop.eup %2182 }
 0x3b1   :  { %489 = vrot.lane.b32.xlu1 %v2183_v50, %s2302_s29 }
 0x3b2   :  { %v2185_v52 = vpop.eup %2184 }
 0x3b3   :  { %v483_v53 = vadd.f32 1.0, %v2185_v52 }
 0x3b5   :  { %2186 = vrcp.f32 %v483_v53 }
 0x3c2   :  { %v2187_v54 = vpop.eup %2186 }
 0x3c3   :  { %v487_v57 = vmul.f32 %v2187_v54, %v2437_v32 }
 0x423   :  { %v490_v55 = vpop.permute.xlu1 %489 }
 0x424   :  { %v492_v56 = vmul.f32 %v2187_v54, %v490_v55 }
 0x426   :  { %494 = vrot.lane.b32.xlu0 %v492_v56, %s2303_s30 }
 0x498   :  { %v495_v58 = vpop.permute.xlu0 %494 }
 0x499   :  { %v2479_v59 = vadd.f32 %v495_v58, %v487_v57 }
 0x49b   :  { %2188 = vtanh.f32 %v2479_v59 }
 0x4a8   :  { %v2189_v60 = vpop.eup %2188 }
 0x4a9   :  { %500 = vrot.lane.b32.xlu1 %v2189_v60, %s2302_s29 }
 0x51b   :  { %v501_v61 = vpop.permute.xlu1 %500 }
 0x51c   :  { %v503_v62 = vmul.f32 %v2187_v54, %v501_v61 }
 0x51e   :  { %v580_v63 = vrot.slane %v503_v62, 1  ;;  %505 = vrot.lane.b32.xlu1 %v503_v62, %s2303_s30 }
 0x520   :  { %581 = vrot.lane.b32.xlu0 %v580_v63, %s2303_s30 }
 0x590   :  { %v506_v9 = vpop.permute.xlu1 %505 }
 0x591   :  { %2020 = vmatmul.mubr.msk.f32.vlgmr.msra.gmra.mxu0 %vm137_vm2, %v506_v9 }
 0x592   :  { %v582_v11 = vpop.permute.xlu0 %581  ;;  %2034 = vmatpush3.msra.mxu0 %v2344_v0  ;;  %2041 = vmatprep.mubr.msk.f32.mxu0 %vm2301_vm0, %v2300_v2 }
 0x593   :  { %2031 = vmatmul.mubr.msk.f32.vlgmr.msra.gmra.mxu1 %vm137_vm2, %v582_v11  ;;  %2035 = vmatprep.subr.mxu0 %v2300_v2 }
 0x594   :  { %2036 = vmatpush3.msra.mxu0 %v2356_v3  ;;  %2045 = vmatpush3.msra.mxu1 %v2349_v1 }
 0x595   :  { %2037 = vmatprep.subr.mxu0 %v2300_v2  ;;  %2046 = vmatprep.subr.mxu1 %v2300_v2 }
 0x596   :  { %2038 = vmatpush3.msra.mxu0 %v2370_v5  ;;  %2047 = vmatpush3.msra.mxu1 %v2361_v4 }
 0x597   :  { %2039 = vmatprep.subr.mxu0 %v2300_v2  ;;  %2048 = vmatprep.subr.mxu1 %v2300_v2 }
 0x598   :  { %2040 = vmatpush3.msra.mxu0 %v2384_v7  ;;  %2049 = vmatpush3.msra.mxu1 %v2375_v6 }
 0x599   :  { %2050 = vmatprep.subr.mxu1 %v2300_v2  ;;  %2052 = vmatprep.mubr.msk.f32.mxu1 %vm2301_vm0, %v2300_v2 }
 0x59a   :  { %2051 = vmatpush3.msra.mxu1 %v2391_v8  ;;  %2055 = vmatprep.subr.mxu0 %v2300_v2 }
 0x59b   :  { %2066 = vmatprep.subr.mxu1 %v2300_v2 }
 0x651   :  { %v575_v16 = vpop.f32.mrf.mxu0 }
 0x652   :  { %v579_v22 = vadd.f32 %v575_v16, %v2510_v17 }
 0x653   :  { %v2021_v18 = vpop.f32.mrf.mxu0  ;;  %v651_v19 = vpop.f32.mrf.mxu1 }
 0x654   :  { %v658_v20 = vadd.f32 %v656_v15, %v651_v19 }
 0x655   :  { %v2032_v21 = vpop.f32.mrf.mxu1 }
 0x656   :  { %v663_v23 = vrot.slane %v658_v20, %v2430_v14  ;;  %v1028_v21 = vrot.slane %v87_v47, 1 }
 0x658   :  { %v665_v24 = vsel %vm292_vm1, %v579_v22, %v663_v23 }
 0x659   :  { %2190 = vtanh.f32 %v665_v24  ;;  %v1851_v26 = vmul.f32 -1.442695, %v665_v24 }
 0x65b   :  { %2192 = vpow2.f32 %v1851_v26 }
 0x666   :  { %v2191_v25 = vpop.eup %2190 }
 0x667   :  { %675 = vrot.lane.b32.xlu0 %v2191_v25, %s2302_s29 }
 0x668   :  { %v2193_v27 = vpop.eup %2192 }
 0x669   :  { %v669_v28 = vadd.f32 1.0, %v2193_v27 }
 0x66b   :  { %2194 = vrcp.f32 %v669_v28 }
 0x678   :  { %v2195_v29 = vpop.eup %2194 }
 0x679   :  { %v673_v32 = vmul.f32 %v2195_v29, %v2479_v59 }
 0x6d9   :  { %v676_v30 = vpop.permute.xlu0 %675 }
 0x6da   :  { %v678_v31 = vmul.f32 %v2195_v29, %v676_v30 }
 0x6dc   :  { %680 = vrot.lane.b32.xlu1 %v678_v31, %s2303_s30 }
 0x74e   :  { %v681_v33 = vpop.permute.xlu1 %680 }
 0x74f   :  { %v2518_v34 = vadd.f32 %v681_v33, %v673_v32 }
 0x751   :  { %2196 = vtanh.f32 %v2518_v34 }
 0x75e   :  { %v2197_v35 = vpop.eup %2196 }
 0x75f   :  { %686 = vrot.lane.b32.xlu0 %v2197_v35, %s2302_s29 }
 0x7d1   :  { %v687_v36 = vpop.permute.xlu0 %686 }
 0x7d2   :  { %v689_v37 = vmul.f32 %v2195_v29, %v687_v36 }
 0x7d4   :  { %v766_v40 = vrot.slane %v689_v37, 1  ;;  %691 = vrot.lane.b32.xlu0 %v689_v37, %s2303_s30 }
 0x7d6   :  { %767 = vrot.lane.b32.xlu1 %v766_v40, %s2303_s30 }
 0x846   :  { %v692_v41 = vpop.permute.xlu0 %691 }
 0x847   :  { %2042 = vmatmul.mubr.msk.f32.vlgmr.msra.gmra.mxu0 %vm137_vm2, %v692_v41 }
 0x848   :  { %v768_v43 = vpop.permute.xlu1 %767  ;;  %2056 = vmatpush3.msra.mxu0 %v2344_v0  ;;  %2063 = vmatprep.mubr.msk.f32.mxu0 %vm2301_vm0, %v2300_v2 }
 0x849   :  { %2053 = vmatmul.mubr.msk.f32.vlgmr.msra.gmra.mxu1 %vm137_vm2, %v768_v43  ;;  %2057 = vmatprep.subr.mxu0 %v2300_v2 }
 0x84a   :  { %2058 = vmatpush3.msra.mxu0 %v2356_v3  ;;  %2067 = vmatpush3.msra.mxu1 %v2349_v1 }
 0x84b   :  { %2059 = vmatprep.subr.mxu0 %v2300_v2  ;;  %2068 = vmatprep.subr.mxu1 %v2300_v2 }
 0x84c   :  { %2060 = vmatpush3.msra.mxu0 %v2370_v5  ;;  %2069 = vmatpush3.msra.mxu1 %v2361_v4 }
 0x84d   :  { %2061 = vmatprep.subr.mxu0 %v2300_v2  ;;  %2070 = vmatprep.subr.mxu1 %v2300_v2 }
 0x84e   :  { %2062 = vmatpush3.msra.mxu0 %v2384_v7  ;;  %2071 = vmatpush3.msra.mxu1 %v2375_v6 }
 0x84f   :  { %2072 = vmatprep.subr.mxu1 %v2300_v2  ;;  %2074 = vmatprep.mubr.msk.f32.mxu1 %vm2301_vm0, %v2300_v2 }
 0x850   :  { %2073 = vmatpush3.msra.mxu1 %v2391_v8  ;;  %2077 = vmatprep.subr.mxu0 %v2300_v2 }
 0x851   :  { %2088 = vmatprep.subr.mxu1 %v2300_v2 }
 0x907   :  { %v761_v46 = vpop.f32.mrf.mxu0 }
 0x908   :  { %v765_v52 = vadd.f32 %v761_v46, %v87_v47 }
 0x909   :  { %v2043_v48 = vpop.f32.mrf.mxu0  ;;  %v837_v49 = vpop.f32.mrf.mxu1 }
 0x90a   :  { %v844_v50 = vadd.f32 %v842_v45, %v837_v49  ;;  %v1214_v49 = vrot.slane %v2510_v17, 1 }
 0x90b   :  { %v2054_v51 = vpop.f32.mrf.mxu1 }
 0x90c   :  { %v849_v53 = vrot.slane %v844_v50, %v2430_v14 }
 0x90e   :  { %v851_v54 = vsel %vm292_vm1, %v765_v52, %v849_v53 }
 0x90f   :  { %2198 = vtanh.f32 %v851_v54  ;;  %v1854_v56 = vmul.f32 -1.442695, %v851_v54 }
 0x911   :  { %2200 = vpow2.f32 %v1854_v56 }
 0x91c   :  { %v2199_v55 = vpop.eup %2198 }
 0x91d   :  { %861 = vrot.lane.b32.xlu1 %v2199_v55, %s2302_s29 }
 0x91e   :  { %v2201_v57 = vpop.eup %2200 }
 0x91f   :  { %v855_v58 = vadd.f32 1.0, %v2201_v57 }
 0x921   :  { %2202 = vrcp.f32 %v855_v58 }
 0x92e   :  { %v2203_v59 = vpop.eup %2202 }
 0x92f   :  { %v859_v62 = vmul.f32 %v2203_v59, %v2518_v34 }
 0x98f   :  { %v862_v60 = vpop.permute.xlu1 %861 }
 0x990   :  { %v864_v61 = vmul.f32 %v2203_v59, %v862_v60 }
 0x992   :  { %866 = vrot.lane.b32.xlu0 %v864_v61, %s2303_s30 }
 0xa04   :  { %v867_v63 = vpop.permute.xlu0 %866 }
 0xa05   :  { %v869_v9 = vadd.f32 %v867_v63, %v859_v62 }
 0xa07   :  { %2204 = vtanh.f32 %v869_v9 }
 0xa14   :  { %v2205_v11 = vpop.eup %2204 }
 0xa15   :  { %872 = vrot.lane.b32.xlu1 %v2205_v11, %s2302_s29 }
 0xa87   :  { %v873_v15 = vpop.permute.xlu1 %872 }
 0xa88   :  { %v875_v16 = vmul.f32 %v2203_v59, %v873_v15 }
 0xa8a   :  { %v952_v18 = vrot.slane %v875_v16, 1  ;;  %877 = vrot.lane.b32.xlu1 %v875_v16, %s2303_s30 }
 0xa8c   :  { %953 = vrot.lane.b32.xlu0 %v952_v18, %s2303_s30 }
 0xafc   :  { %v878_v19 = vpop.permute.xlu1 %877 }
 0xafd   :  { %2064 = vmatmul.mubr.msk.f32.vlgmr.msra.gmra.mxu0 %vm137_vm2, %v878_v19 }
 0xafe   :  { %v954_v20 = vpop.permute.xlu0 %953  ;;  %2078 = vmatpush3.msra.mxu0 %v2344_v0  ;;  %2085 = vmatprep.mubr.msk.f32.mxu0 %vm2301_vm0, %v2300_v2 }
 0xaff   :  { %2075 = vmatmul.mubr.msk.f32.vlgmr.msra.gmra.mxu1 %vm137_vm2, %v954_v20  ;;  %2079 = vmatprep.subr.mxu0 %v2300_v2 }
 0xb00   :  { %2080 = vmatpush3.msra.mxu0 %v2356_v3  ;;  %2089 = vmatpush3.msra.mxu1 %v2349_v1 }
 0xb01   :  { %2081 = vmatprep.subr.mxu0 %v2300_v2  ;;  %2090 = vmatprep.subr.mxu1 %v2300_v2 }
 0xb02   :  { %2082 = vmatpush3.msra.mxu0 %v2370_v5  ;;  %2091 = vmatpush3.msra.mxu1 %v2361_v4 }
 0xb03   :  { %2083 = vmatprep.subr.mxu0 %v2300_v2  ;;  %2092 = vmatprep.subr.mxu1 %v2300_v2 }
 0xb04   :  { %2084 = vmatpush3.msra.mxu0 %v2384_v7  ;;  %2093 = vmatpush3.msra.mxu1 %v2375_v6 }
 0xb05   :  { %2094 = vmatprep.subr.mxu1 %v2300_v2  ;;  %2096 = vmatprep.mubr.msk.f32.mxu1 %vm2301_vm0, %v2300_v2 }
 0xb06   :  { %2095 = vmatpush3.msra.mxu1 %v2391_v8  ;;  %2099 = vmatprep.subr.mxu0 %v2300_v2 }
 0xb07   :  { %2110 = vmatprep.subr.mxu1 %v2300_v2 }
 0xbbd   :  { %v947_v22 = vpop.f32.mrf.mxu0 }
 0xbbe   :  { %v951_v27 = vadd.f32 %v947_v22, %v2546_v44 }
 0xbbf   :  { %v2065_v23 = vpop.f32.mrf.mxu0  ;;  %v1023_v24 = vpop.f32.mrf.mxu1 }
 0xbc0   :  { %v1030_v25 = vadd.f32 %v1028_v21, %v1023_v24 }
 0xbc1   :  { %v2076_v26 = vpop.f32.mrf.mxu1 }
 0xbc2   :  { %v1035_v28 = vrot.slane %v1030_v25, %v2430_v14 }
 0xbc4   :  { %v1037_v29 = vsel %vm292_vm1, %v951_v27, %v1035_v28 }
 0xbc5   :  { %2206 = vtanh.f32 %v1037_v29  ;;  %v1857_v31 = vmul.f32 -1.442695, %v1037_v29 }
 0xbc7   :  { %2208 = vpow2.f32 %v1857_v31 }
 0xbd2   :  { %v2207_v30 = vpop.eup %2206 }
 0xbd3   :  { %1047 = vrot.lane.b32.xlu0 %v2207_v30, %s2302_s29 }
 0xbd4   :  { %v2209_v32 = vpop.eup %2208 }
 0xbd5   :  { %v1041_v33 = vadd.f32 1.0, %v2209_v32 }
 0xbd7   :  { %2210 = vrcp.f32 %v1041_v33 }
 0xbe4   :  { %v2211_v34 = vpop.eup %2210 }
 0xbe5   :  { %v1045_v37 = vmul.f32 %v2211_v34, %v869_v9 }
 0xc45   :  { %v1048_v35 = vpop.permute.xlu0 %1047 }
 0xc46   :  { %v1050_v36 = vmul.f32 %v2211_v34, %v1048_v35 }
 0xc48   :  { %1052 = vrot.lane.b32.xlu1 %v1050_v36, %s2303_s30  ;;  %v1704_v36 = vld [vmem:[%s2705_s3 + $0x38] sm:$0xff] }
 0xcba   :  { %v1053_v40 = vpop.permute.xlu1 %1052 }
 0xcbb   :  { %v1055_v41 = vadd.f32 %v1053_v40, %v1045_v37  ;;  %v1703_v40 = vld [vmem:[%s2705_s3 + $0x30] sm:$0xff] }
 0xcbd   :  { %2212 = vtanh.f32 %v1055_v41 }
 0xcca   :  { %v2213_v43 = vpop.eup %2212 }
 0xccb   :  { %1058 = vrot.lane.b32.xlu0 %v2213_v43, %s2302_s29  ;;  %v1701_v43 = vld [vmem:[%s2705_s3 + $0x20] sm:$0xff] }
 0xd3d   :  { %v1059_v44 = vpop.permute.xlu0 %1058 }
 0xd3e   :  { %v1061_v45 = vmul.f32 %v2211_v34, %v1059_v44  ;;  %v1586_v44 = vrot.slane %v2428_v13, 1 }
 0xd40   :  { %v1138_v46 = vrot.slane %v1061_v45, 1  ;;  %1063 = vrot.lane.b32.xlu0 %v1061_v45, %s2303_s30 }
 0xd42   :  { %1139 = vrot.lane.b32.xlu1 %v1138_v46, %s2303_s30 }
 0xdb2   :  { %v1064_v47 = vpop.permute.xlu0 %1063 }
 0xdb3   :  { %2086 = vmatmul.mubr.msk.f32.vlgmr.msra.gmra.mxu0 %vm137_vm2, %v1064_v47 }
 0xdb4   :  { %v1140_v48 = vpop.permute.xlu1 %1139  ;;  %2100 = vmatpush3.msra.mxu0 %v2344_v0  ;;  %2107 = vmatprep.mubr.msk.f32.mxu0 %vm2301_vm0, %v2300_v2 }
 0xdb5   :  { %2097 = vmatmul.mubr.msk.f32.vlgmr.msra.gmra.mxu1 %vm137_vm2, %v1140_v48  ;;  %2101 = vmatprep.subr.mxu0 %v2300_v2 }
 0xdb6   :  { %2102 = vmatpush3.msra.mxu0 %v2356_v3  ;;  %2111 = vmatpush3.msra.mxu1 %v2349_v1 }
 0xdb7   :  { %2103 = vmatprep.subr.mxu0 %v2300_v2  ;;  %2112 = vmatprep.subr.mxu1 %v2300_v2 }
 0xdb8   :  { %2104 = vmatpush3.msra.mxu0 %v2370_v5  ;;  %2113 = vmatpush3.msra.mxu1 %v2361_v4 }
 0xdb9   :  { %2105 = vmatprep.subr.mxu0 %v2300_v2  ;;  %2114 = vmatprep.subr.mxu1 %v2300_v2 }
 0xdba   :  { %2106 = vmatpush3.msra.mxu0 %v2384_v7  ;;  %2115 = vmatpush3.msra.mxu1 %v2375_v6 }
 0xdbb   :  { %2116 = vmatprep.subr.mxu1 %v2300_v2  ;;  %2118 = vmatprep.mubr.msk.f32.mxu1 %vm2301_vm0, %v2300_v2 }
 0xdbc   :  { %2117 = vmatpush3.msra.mxu1 %v2391_v8  ;;  %2121 = vmatprep.subr.mxu0 %v2300_v2 }
 0xdbd   :  { %2132 = vmatprep.subr.mxu1 %v2300_v2 }
 0xe73   :  { %v1133_v50 = vpop.f32.mrf.mxu0 }
 0xe74   :  { %v1137_v55 = vadd.f32 %v1133_v50, %v2507_v12 }
 0xe75   :  { %v2087_v51 = vpop.f32.mrf.mxu0  ;;  %v1209_v52 = vpop.f32.mrf.mxu1 }
 0xe76   :  { %v1216_v53 = vadd.f32 %v1214_v49, %v1209_v52 }
 0xe77   :  { %v2098_v54 = vpop.f32.mrf.mxu1 }
 0xe78   :  { %v1221_v56 = vrot.slane %v1216_v53, %v2430_v14 }
 0xe7a   :  { %v1223_v57 = vsel %vm292_vm1, %v1137_v55, %v1221_v56 }
 0xe7b   :  { %2214 = vtanh.f32 %v1223_v57  ;;  %v1860_v59 = vmul.f32 -1.442695, %v1223_v57 }
 0xe7d   :  { %2216 = vpow2.f32 %v1860_v59 }
 0xe88   :  { %v2215_v58 = vpop.eup %2214 }
 0xe89   :  { %1233 = vrot.lane.b32.xlu1 %v2215_v58, %s2302_s29 }
 0xe8a   :  { %v2217_v60 = vpop.eup %2216 }
 0xe8b   :  { %v1227_v61 = vadd.f32 1.0, %v2217_v60 }
 0xe8d   :  { %2218 = vrcp.f32 %v1227_v61  ;;  %v1624_v61 = vld [vmem:[%s2705_s3 + $0x18] sm:$0xff] }
 0xe9a   :  { %v2219_v17 = vpop.eup %2218 }
 0xe9b   :  { %v1231_v9 = vmul.f32 %v2219_v17, %v1055_v41  ;;  %v1702_v41 = vld [vmem:[%s2705_s3 + $0x28] sm:$0xff] }
 0xefb   :  { %v1234_v62 = vpop.permute.xlu1 %1233 }
 0xefc   :  { %v1236_v63 = vmul.f32 %v2219_v17, %v1234_v62  ;;  %v1622_v62 = vld [vmem:[%s2705_s3 + $0x8] sm:$0xff] }
 0xefe   :  { %1238 = vrot.lane.b32.xlu0 %v1236_v63, %s2303_s30  ;;  %v1621_v63 = vld [vmem:[%s2705_s3] sm:$0xff] }
 0xf70   :  { %v1239_v12 = vpop.permute.xlu0 %1238 }
 0xf71   :  { %v1241_v11 = vadd.f32 %v1239_v12, %v1231_v9 }
 0xf73   :  { %2220 = vtanh.f32 %v1241_v11 }
 0xf80   :  { %v2221_v15 = vpop.eup %2220 }
 0xf81   :  { %1244 = vrot.lane.b32.xlu1 %v2221_v15, %s2302_s29 }
 0xff3   :  { %v1245_v16 = vpop.permute.xlu1 %1244 }
 0xff4   :  { %v1247_v18 = vmul.f32 %v2219_v17, %v1245_v16  ;;  %v1623_v17 = vld [vmem:[%s2705_s3 + $0x10] sm:$0xff]  ;;  %v1620_v16 = vld [vmem:[%s2706_s4] sm:$0x1]  ;;  %s2304_s3 = smov [#allocation7]  }
 0xff5   :  { %s1784_s1 = sshll.u32 %s2304_s3, 4  ;;  %s1785_s1 = int_to_ptr.vmem [resolvable:$true] %s1784_s1 }
 0xff6   :  { %v1324_v19 = vrot.slane %v1247_v18, 1  ;;  %1249 = vrot.lane.b32.xlu1 %v1247_v18, %s2303_s30  ;;  %s2274_s8 = scalar_lea.vmem %s1785_s1, 32  ;;  %p2275_p11 = scmp.lt.s32.totalorder %s1785_s1, %s1785_s1 }
 0xff8   :  { %1325 = vrot.lane.b32.xlu0 %v1324_v19, %s2303_s30 }
0x1068   :  { %v1250_v20 = vpop.permute.xlu1 %1249 }
0x1069   :  { %2108 = vmatmul.mubr.msk.f32.vlgmr.msra.gmra.mxu0 %vm137_vm2, %v1250_v20 }
0x106a   :  { %v1326_v21 = vpop.permute.xlu0 %1325  ;;  %2122 = vmatpush3.msra.mxu0 %v2344_v0  ;;  %2129 = vmatprep.mubr.msk.f32.mxu0 %vm2301_vm0, %v2300_v2  ;;  %v1400_v0 = vrot.slane %v2471_v42, 1 }
0x106b   :  { %2119 = vmatmul.mubr.msk.f32.vlgmr.msra.gmra.mxu1 %vm137_vm2, %v1326_v21  ;;  %2123 = vmatprep.subr.mxu0 %v2300_v2 }
0x106c   :  { %2133 = vmatpush3.msra.mxu1 %v2349_v1  ;;  %2124 = vmatpush3.msra.mxu0 %v2356_v3 }
0x106d   :  { %2134 = vmatprep.subr.mxu1 %v2300_v2  ;;  %2125 = vmatprep.subr.mxu0 %v2300_v2 }
0x106e   :  { %2135 = vmatpush3.msra.mxu1 %v2361_v4  ;;  %2126 = vmatpush3.msra.mxu0 %v2370_v5 }
0x106f   :  { %2136 = vmatprep.subr.mxu1 %v2300_v2  ;;  %2127 = vmatprep.subr.mxu0 %v2300_v2 }
0x1070   :  { %2137 = vmatpush3.msra.mxu1 %v2375_v6  ;;  %2128 = vmatpush3.msra.mxu0 %v2384_v7 }
0x1071   :  { %2138 = vmatprep.subr.mxu1 %v2300_v2  ;;  %2140 = vmatprep.mubr.msk.f32.mxu1 %vm2301_vm0, %v2300_v2 }
0x1072   :  { %2139 = vmatpush3.msra.mxu1 %v2391_v8  ;;  %2143 = vmatprep.subr.mxu0 %v2300_v2 }
0x1073   :  { %2154 = vmatprep.subr.mxu1 %v2300_v2 }
0x1129   :  { %v1319_v1 = vpop.f32.mrf.mxu0 }
0x112a   :  { %v1323_v7 = vadd.f32 %v1319_v1, %v2468_v39 }
0x112b   :  { %v2109_v3 = vpop.f32.mrf.mxu0  ;;  %v1395_v4 = vpop.f32.mrf.mxu1 }
0x112c   :  { %v1402_v5 = vadd.f32 %v1400_v0, %v1395_v4 }
0x112d   :  { %v2120_v6 = vpop.f32.mrf.mxu1 }
0x112e   :  { %v1407_v22 = vrot.slane %v1402_v5, %v2430_v14 }
0x1130   :  { %v1409_v23 = vsel %vm292_vm1, %v1323_v7, %v1407_v22 }
0x1131   :  { %2222 = vtanh.f32 %v1409_v23  ;;  %v1863_v8 = vmul.f32 -1.442695, %v1409_v23 }
0x1133   :  { %2224 = vpow2.f32 %v1863_v8 }
0x113e   :  { %v2223_v24 = vpop.eup %2222 }
0x113f   :  { %1419 = vrot.lane.b32.xlu0 %v2223_v24, %s2302_s29 }
0x1140   :  { %v2225_v25 = vpop.eup %2224 }
0x1141   :  { %v1413_v26 = vadd.f32 1.0, %v2225_v25 }
0x1143   :  { %2226 = vrcp.f32 %v1413_v26 }
0x1150   :  { %v2227_v42 = vpop.eup %2226 }
0x1151   :  { %v1417_v29 = vmul.f32 %v2227_v42, %v1241_v11 }
0x11b1   :  { %v1420_v27 = vpop.permute.xlu0 %1419 }
0x11b2   :  { %v1422_v28 = vmul.f32 %v2227_v42, %v1420_v27 }
0x11b4   :  { %1424 = vrot.lane.b32.xlu1 %v1422_v28, %s2303_s30 }
0x1226   :  { %v1425_v39 = vpop.permute.xlu1 %1424 }
0x1227   :  { %v1427_v30 = vadd.f32 %v1425_v39, %v1417_v29 }
0x1229   :  { %2228 = vtanh.f32 %v1427_v30 }
0x1236   :  { %v2229_v31 = vpop.eup %2228 }
0x1237   :  { %1430 = vrot.lane.b32.xlu0 %v2229_v31, %s2302_s29 }
0x12a9   :  { %v1431_v32 = vpop.permute.xlu0 %1430 }
0x12aa   :  { %v1433_v33 = vmul.f32 %v2227_v42, %v1431_v32 }
0x12ac   :  { %v1510_v34 = vrot.slane %v1433_v33, 1  ;;  %1435 = vrot.lane.b32.xlu0 %v1433_v33, %s2303_s30 }
0x12ae   :  { %1511 = vrot.lane.b32.xlu1 %v1510_v34, %s2303_s30 }
0x131e   :  { %v1436_v35 = vpop.permute.xlu0 %1435 }
0x131f   :  { %2130 = vmatmul.mubr.msk.f32.vlgmr.msra.gmra.mxu0 %vm137_vm2, %v1436_v35 }
0x1320   :  { %v1512_v37 = vpop.permute.xlu1 %1511  ;;  %2151 = vmatprep.mubr.msk.f32.mxu0 %vm2301_vm0, %v2300_v2  ;;  %2144 = vmatpush3.msra.mxu0 %v1624_v61 }
0x1321   :  { %2141 = vmatmul.mubr.msk.f32.vlgmr.msra.gmra.mxu1 %vm137_vm2, %v1512_v37  ;;  %2145 = vmatprep.subr.mxu0 %v2300_v2 }
0x1322   :  { %2155 = vmatpush3.msra.mxu1 %v1704_v36  ;;  %2162 = vmatprep.mubr.msk.f32.mxu1 %vm2301_vm0, %v2300_v2 }
0x1323   :  { %2156 = vmatprep.subr.mxu1 %v2300_v2  ;;  %2146 = vmatpush3.msra.mxu0 %v1623_v17 }
0x1324   :  { %2157 = vmatpush3.msra.mxu1 %v1703_v40  ;;  %2147 = vmatprep.subr.mxu0 %v2300_v2 }
0x1325   :  { %2158 = vmatprep.subr.mxu1 %v2300_v2  ;;  %2148 = vmatpush3.msra.mxu0 %v1622_v62 }
0x1326   :  { %2159 = vmatpush3.msra.mxu1 %v1702_v41  ;;  %2149 = vmatprep.subr.mxu0 %v2300_v2 }
0x1327   :  { %2160 = vmatprep.subr.mxu1 %v2300_v2  ;;  %2150 = vmatpush3.msra.mxu0 %v1621_v63 }
0x1328   :  { %2161 = vmatpush3.msra.mxu1 %v1701_v43 }
0x1329   :  { %2163 = vmatmul.mubr.msk.f32.vlgmr.msra.gmra.mxu1 %vm137_vm2, %v2444_v38 }
0x13df   :  { %v1505_v45 = vpop.f32.mrf.mxu0 }
0x13e0   :  { %v1509_v50 = vadd.f32 %v1505_v45, %v2425_v10 }
0x13e1   :  { %v2131_v46 = vpop.f32.mrf.mxu0  ;;  %v1581_v47 = vpop.f32.mrf.mxu1 }
0x13e2   :  { %v1588_v48 = vadd.f32 %v1586_v44, %v1581_v47 }
0x13e3   :  { %v2142_v49 = vpop.f32.mrf.mxu1 }
0x13e4   :  { %v1593_v51 = vrot.slane %v1588_v48, %v2430_v14 }
0x13e6   :  { %v1595_v52 = vsel %vm292_vm1, %v1509_v50, %v1593_v51 }
0x13e7   :  { %2230 = vtanh.f32 %v1595_v52  ;;  %v1866_v38 = vmul.f32 -1.442695, %v1595_v52 }
0x13e9   :  { %v1771_v53 = vpop.f32.mrf.mxu1  ;;  %2232 = vpow2.f32 %v1866_v38 }
0x13eb   :  { %v2164_v54 = vpop.f32.mrf.mxu1 }
0x13f4   :  { %v2231_v55 = vpop.eup %2230 }
0x13f5   :  { %1605 = vrot.lane.b32.xlu1 %v2231_v55, %s2302_s29 }
0x13f6   :  { %v2233_v13 = vpop.eup %2232 }
0x13f7   :  { %v1599_v56 = vadd.f32 1.0, %v2233_v13 }
0x13f9   :  { %2234 = vrcp.f32 %v1599_v56 }
0x1406   :  { %v2235_v57 = vpop.eup %2234 }
0x1407   :  { %v1603_v10 = vmul.f32 %v2235_v57, %v1427_v30 }
0x1467   :  { %v1606_v58 = vpop.permute.xlu1 %1605 }
0x1468   :  { %v1608_v59 = vmul.f32 %v2235_v57, %v1606_v58 }
0x146a   :  { %1610 = vrot.lane.b32.xlu0 %v1608_v59, %s2303_s30 }
0x14dc   :  { %v1611_v14 = vpop.permute.xlu0 %1610 }
0x14dd   :  { %v1613_v60 = vadd.f32 %v1611_v14, %v1603_v10 }
0x14df   :  { %2236 = vtanh.f32 %v1613_v60 }
0x14ec   :  { %v2237_v9 = vpop.eup %2236 }
0x14ed   :  { %1616 = vrot.lane.b32.xlu1 %v2237_v9, %s2302_s29  ;;  %s2270_s29 = scalar_lea.vmem %s1785_s1, 16 }
0x14ee   :  { %p2271_p10 = scmp.ne.s32.totalorder %s1785_s1, %s2270_s29  ;;  %p2276_p12 = scmp.lt.s32.totalorder %s2274_s8, %s2270_s29 }
0x14f0   :  { %p2277_p13 = por %p2276_p12, %p2275_p11 }
0x14f2   :  { %p2278_p0 = pnand %p2277_p13, %p2271_p10 }
0x155f   :  { %v1617_v12 = vpop.permute.xlu1 %1616 }
0x1560   :  { %v1619_v11 = vmul.f32 %v2235_v57, %v1617_v12 }
0x1562   :  { %1626 = vrot.lane.b32.xlu0 %v1619_v11, %s2303_s30 }
0x15d4   :  { %v1627_v15 = vpop.permute.xlu0 %1626 }
0x15d5   :  { %2152 = vmatmul.mubr.msk.f32.vlgmr.msra.gmra.mxu0 %vm137_vm2, %v1627_v15 }
0x1695   :  { %v1696_v18 = vpop.f32.mrf.mxu0 }
0x1696   :  { %v1700_v19 = vadd.f32 %v1696_v18, %v1620_v16 }
0x1697   :  { %v2153_v2 = vpop.f32.mrf.mxu0 }
0x1698   :  { %v1775_v20 = vadd.f32 %v1771_v53, %v1700_v19 }
0x169a   :  { %1777 = vst.msk [vmem:[#allocation7] sm:$0x1] %vm1776_vm3, %v1775_v20 }
0x169b   :  { %2281 = shalt.err (!%p2278_p0)
}
0x169c   :  { %1787 = dma.vmem_to_hbm [thread:$0]  %s1785_s1, 16, %s2707_s5, [#allocation4]  }
0x169d   :  { %2294 = dma.done.wait [#allocation4], 16  }
0x169e   :  { %2295 = vsyncadd [#allocation4], 4294967280 }
0x169f   :  { %1791 = vsyncpa [#allocation3], 1 }
0x16a0   :  { %1792 = vsyncpa [#allocation4], 1 }
0x16a1   :  { %1793 = vsyncpa [#allocation5], 1 }

</bundles_post_ra>
